<compile_context>
chip_gen: v7x
topology: tpu7x:2x2x1
jax: 0.10.0
libtpu: 0.0.40
codegen_flags: <defaults>
</compile_context>

<pallas_src>
import functools

import jax
import jax.numpy as jnp
from jax import lax
from jax.experimental import pallas as pl
from jax.experimental.pallas import tpu as pltpu

_MIB = 1024 * 1024


# --------------------------------------------------------------------------
# Kernels
# --------------------------------------------------------------------------
def _excite(y, w1_ref, w2_ref):
    """Linear(C->Cr) -> ReLU -> Linear(Cr->C) -> Sigmoid on y: (N, C) f32.

    w1_ref holds torch-native (Cr, C); w2_ref holds torch w2 transposed, also
    (Cr, C), so both weight tiles keep C on the 128-lane axis.
    """
    w1 = w1_ref[...].astype(jnp.float32)                        # (Cr, C)
    w2t = w2_ref[...].astype(jnp.float32)                       # (Cr, C)
    h = lax.dot_general(y, w1, (((1,), (1,)), ((), ())),
                        preferred_element_type=jnp.float32)     # (N, Cr)
    h = jnp.maximum(h, 0.0)
    s = jnp.dot(h, w2t, preferred_element_type=jnp.float32)     # (N, C)
    return jax.nn.sigmoid(s)


def se_fused_kernel(x_ref, w1_ref, w2_ref, o_ref, *, inv_hw):
    # x_ref: (Bt, C, HW).  Squeeze: f32-accumulated spatial sum read straight
    # from the Ref (no full-block f32 temporary lives in vregs/VMEM).
    y = jnp.sum(x_ref[...], axis=-1, dtype=jnp.float32) * inv_hw    # (Bt, C)
    gate = _excite(y, w1_ref, w2_ref).astype(o_ref.dtype)           # (Bt, C)
    # Scale: second read of the Ref, native-dtype multiply, per-channel gate
    # broadcast over the spatial lanes.
    o_ref[...] = x_ref[...] * gate[:, :, None]


def se_gate_kernel(x_ref, w1_ref, w2_ref, g_ref, acc_ref, *, hw, thw, inv_hw):
    # Pass 1 of the fallback: accumulate the spatial sum over HW tiles, then
    # compute the per-channel gate at the last tile.  Grid = (B, n_hw).
    h = pl.program_id(1)

    @pl.when(h == 0)
    def _():
        acc_ref[...] = jnp.zeros_like(acc_ref)

    xblk = x_ref[...]                                           # (1, C, THW)
    if hw % thw:
        # Last spatial tile is padded; its contents are unspecified -> mask.
        valid = hw - h * thw
        idx = lax.broadcasted_iota(jnp.int32, xblk.shape, 2)
        xblk = jnp.where(idx < valid, xblk, 0)
    acc_ref[...] += jnp.sum(xblk, axis=-1, dtype=jnp.float32)   # (1, C)

    @pl.when(h == pl.num_programs(1) - 1)
    def _():
        y = acc_ref[...] * inv_hw                               # (1, C)
        gate = _excite(y, w1_ref, w2_ref).astype(g_ref.dtype)   # (1, C)
        g_ref[...] = gate[:, :, None]                           # (1, C, 1)


def se_scale_kernel(x_ref, g_ref, o_ref):
    # Pass 2 of the fallback: per-channel gate broadcast over spatial lanes.
    o_ref[...] = x_ref[...] * g_ref[...]


# --------------------------------------------------------------------------
# Tiling / VMEM heuristics
# --------------------------------------------------------------------------
def _vmem_capacity_bytes():
    """Physical VMEM of the local chip; conservative 64 MiB (v7x) fallback."""
    try:
        cap = getattr(pltpu.get_tpu_info(), "vmem_capacity_bytes", None)
        if cap:
            return int(cap)
    except Exception:
        pass
    return 64 * _MIB


def _choose_block_batch(B, C, HW, itemsize, budget_bytes):
    """Rows of x per grid step for the fused path (0 => use the tiled path).

    Preference: even number of grid steps (v7x's two TensorCores share the
    'parallel' batch axis), then no padded batch rows, then fewest steps
    (largest blocks / biggest DMAs).
    """
    per_row = 4 * C * HW * itemsize            # 2 buffers x (in + out) per row
    max_bt = min(B, budget_bytes // per_row)
    if max_bt < 1:
        return 0

    def rank(bt):
        steps = -(-B // bt)
        return (steps % 2, bt * steps - B, steps)

    return min(range(1, int(max_bt) + 1), key=rank)


def _choose_spatial_tile(C, HW, itemsize, budget_bytes):
    """Lane-dense spatial tile (multiple of 128) for the two-pass fallback."""
    if HW <= 128:
        return HW
    max_thw = budget_bytes // (4 * C * itemsize)
    thw = max(128, (int(max_thw) // 128) * 128)
    # TODO(synk): if even a (1, C, 128) block exceeds VMEM (enormous C), add a
    # channel tile axis as well.
    return min(thw, HW)


# --------------------------------------------------------------------------
# Public wrapper
# --------------------------------------------------------------------------
def se_layer(x, w1, w2, *, block_budget_bytes=None):
    """Squeeze-and-Excitation forward pass (matches the PyTorch SELayer).

    x:  (B, C, H, W)
    w1: (C//r, C)  -- torch nn.Linear(C, C//r, bias=False).weight  (out, in)
    w2: (C, C//r)  -- torch nn.Linear(C//r, C, bias=False).weight  (out, in)
    block_budget_bytes: optional override of the VMEM block budget (testing).
    """
    B, C, H, W = x.shape
    Cr = w1.shape[0]
    HW = H * W
    itemsize = jnp.dtype(x.dtype).itemsize

    x3 = x.reshape(B, C, HW)
    # Torch w2 is (C, Cr); keep C on the lane axis inside the kernel.  (Tiny
    # transpose; hoist to parameter-prep time if calling in a hot loop.)
    w2t = w2.T
    weight_bytes = 2 * Cr * C * jnp.dtype(w1.dtype).itemsize    # w1 + w2t

    cap = _vmem_capacity_bytes()
    hard_cap = min(cap - 16 * _MIB, int(0.8 * cap))             # scoped-VMEM cap
    if block_budget_bytes is None:
        block_budget_bytes = max(16 * _MIB,
                                 cap // 2 - 2 * weight_bytes - 4 * _MIB)

    inv_hw = 1.0 / HW
    Bt = _choose_block_batch(B, C, HW, itemsize, block_budget_bytes)

    if Bt > 0:
        # ---------------- fused single-pass path --------------------------
        block_bytes = Bt * C * HW * itemsize
        need = 4 * block_bytes + 2 * weight_bytes + 2 * _MIB
        vmem_limit = int(min(hard_cap, max(16 * _MIB, need)))

        out = pl.pallas_call(
            functools.partial(se_fused_kernel, inv_hw=inv_hw),
            out_shape=jax.ShapeDtypeStruct((B, C, HW), x.dtype),
            grid_spec=pltpu.PrefetchScalarGridSpec(
                num_scalar_prefetch=0,
                grid=(pl.cdiv(B, Bt),),
                in_specs=[
                    pl.BlockSpec((Bt, C, HW), lambda b: (b, 0, 0)),
                    # Constant index_map: weights are DMA'd once and stay
                    # resident (default double buffering kept for compile
                    # safety; it is accounted for in the VMEM math above).
                    pl.BlockSpec((Cr, C), lambda b: (0, 0)),
                    pl.BlockSpec((Cr, C), lambda b: (0, 0)),
                ],
                out_specs=pl.BlockSpec((Bt, C, HW), lambda b: (b, 0, 0)),
            ),
            compiler_params=pltpu.CompilerParams(
                dimension_semantics=("parallel",),
                vmem_limit_bytes=vmem_limit,
            ),
        )(x3, w1, w2t)
        return out.reshape(B, C, H, W)

    # ---------------- two-pass spatially-tiled fallback --------------------
    # (large C*HW that does not fit a single-row block, e.g. on v7x's 64 MiB)
    THW = _choose_spatial_tile(C, HW, itemsize, block_budget_bytes)
    n_hw = pl.cdiv(HW, THW)

    gate_need = (2 * C * THW * itemsize + 2 * weight_bytes
                 + 2 * C * itemsize + 4 * C + 2 * _MIB)
    gate_vmem = int(min(hard_cap, max(16 * _MIB, gate_need)))
    gate = pl.pallas_call(
        functools.partial(se_gate_kernel, hw=HW, thw=THW, inv_hw=inv_hw),
        out_shape=jax.ShapeDtypeStruct((B, C, 1), x.dtype),
        grid_spec=pltpu.PrefetchScalarGridSpec(
            num_scalar_prefetch=0,
            grid=(B, n_hw),
            in_specs=[
                pl.BlockSpec((1, C, THW), lambda b, h: (b, 0, h)),
                pl.BlockSpec((Cr, C), lambda b, h: (0, 0)),
                pl.BlockSpec((Cr, C), lambda b, h: (0, 0)),
            ],
            out_specs=pl.BlockSpec((1, C, 1), lambda b, h: (b, 0, 0)),
            scratch_shapes=[pltpu.VMEM((1, C), jnp.float32)],
        ),
        compiler_params=pltpu.CompilerParams(
            dimension_semantics=("parallel", "arbitrary"),
            vmem_limit_bytes=gate_vmem,
        ),
    )(x3, w1, w2t)

    scale_need = 4 * C * THW * itemsize + 2 * C * itemsize + 2 * _MIB
    scale_vmem = int(min(hard_cap, max(16 * _MIB, scale_need)))
    out = pl.pallas_call(
        se_scale_kernel,
        out_shape=jax.ShapeDtypeStruct((B, C, HW), x.dtype),
        grid_spec=pltpu.PrefetchScalarGridSpec(
            num_scalar_prefetch=0,
            grid=(B, n_hw),
            in_specs=[
                pl.BlockSpec((1, C, THW), lambda b, h: (b, 0, h)),
                pl.BlockSpec((1, C, 1), lambda b, h: (b, 0, 0)),
            ],
            out_specs=pl.BlockSpec((1, C, THW), lambda b, h: (b, 0, h)),
        ),
        compiler_params=pltpu.CompilerParams(
            dimension_semantics=("parallel", "parallel"),
            vmem_limit_bytes=scale_vmem,
        ),
    )(x3, gate)
    return out.reshape(B, C, H, W)


def se_layer_ref(x, w1, w2):
    # Pure-JAX reference mirroring the PyTorch forward (torch weight layouts).
    y = jnp.mean(x, axis=(2, 3))                     # (B, C)
    h = jnp.maximum(y @ w1.T, 0.0)                   # (B, C//r)
    s = jax.nn.sigmoid(h @ w2.T)                     # (B, C)
    return x * s[:, :, None, None]


if __name__ == "__main__":
    key = jax.random.PRNGKey(0)

    def make(b, c, h, w, r, k):
        kx, k1, k2 = jax.random.split(k, 3)
        x = jax.random.normal(kx, (b, c, h, w), dtype=jnp.float32)
        # torch nn.Linear weights are (out_features, in_features).
        w1 = jax.random.normal(k1, (c // r, c), dtype=jnp.float32) * 0.1
        w2 = jax.random.normal(k2, (c, c // r), dtype=jnp.float32) * 0.1
        return x, w1, w2

    ka, kb, kc = jax.random.split(key, 3)

    # 1) Fused path, lane-dense spatial (HW = 256).
    x, w1, w2 = make(4, 128, 16, 16, 16, ka)
    out = jax.block_until_ready(se_layer(x, w1, w2))
    assert out.shape == x.shape
    assert jnp.allclose(out, se_layer_ref(x, w1, w2), atol=1e-5, rtol=1e-5)

    # 2) Fused path, HW not a multiple of 128 (7x7): no pad/slice, masked store.
    x, w1, w2 = make(2, 64, 7, 7, 16, kb)
    out = jax.block_until_ready(se_layer(x, w1, w2))
    assert jnp.allclose(out, se_layer_ref(x, w1, w2), atol=1e-5, rtol=1e-5)

    # 3) Two-pass spatially-tiled fallback (forced via a tiny block budget),
    #    with a ragged spatial tail (144 = 128 + 16) exercising the mask.
    x, w1, w2 = make(2, 128, 12, 12, 16, kc)
    out = jax.block_until_ready(
        se_layer(x, w1, w2, block_budget_bytes=256 * 1024))
    assert jnp.allclose(out, se_layer_ref(x, w1, w2), atol=1e-5, rtol=1e-5)

    print("KERNEL_OK")
</pallas_src>

<mosaic_0001>
module attributes {stable_mosaic.version = 11 : i64} {
  func.func @se_fused_kernel(%arg0: i32, %arg1: memref<2x128x256xf32, #tpu.memory_space<vmem>>, %arg2: memref<8x128xf32, #tpu.memory_space<vmem>>, %arg3: memref<8x128xf32, #tpu.memory_space<vmem>>, %arg4: memref<2x128x256xf32, #tpu.memory_space<vmem>>) attributes {dimension_semantics = [#tpu.dimension_semantics<parallel>], iteration_bounds = array<i64: 2>, scalar_prefetch = 0 : i64, scratch_operands = 0 : i64, tpu.core_type = #tpu.core_type<tc>, window_params = [{transform_indices = @transform_0, window_bounds = array<i64: 2, 128, 256>}, {pipeline_mode = #tpu.pipeline_mode<synchronous>, transform_indices = @transform_1, window_bounds = array<i64: 8, 128>}, {pipeline_mode = #tpu.pipeline_mode<synchronous>, transform_indices = @transform_2, window_bounds = array<i64: 8, 128>}, {transform_indices = @transform_3, window_bounds = array<i64: 2, 128, 256>}]} {
    %c0 = arith.constant 0 : index
    %c0_0 = arith.constant 0 : index
    %c0_1 = arith.constant 0 : index
    %0 = vector.load %arg1[%c0, %c0_0, %c0_1] : memref<2x128x256xf32, #tpu.memory_space<vmem>>, vector<2x128x256xf32>
    %cst = arith.constant dense<0.000000e+00> : vector<2x128xf32>
    %1 = vector.multi_reduction <add>, %0, %cst [2] : vector<2x128x256xf32> to vector<2x128xf32>
    %cst_2 = arith.constant 3.906250e-03 : f32
    %2 = vector.broadcast %cst_2 : f32 to vector<2x128xf32>
    %3 = arith.mulf %1, %2 : vector<2x128xf32>
    %c0_3 = arith.constant 0 : index
    %c0_4 = arith.constant 0 : index
    %4 = vector.load %arg2[%c0_3, %c0_4] : memref<8x128xf32, #tpu.memory_space<vmem>>, vector<8x128xf32>
    %c0_5 = arith.constant 0 : index
    %c0_6 = arith.constant 0 : index
    %5 = vector.load %arg3[%c0_5, %c0_6] : memref<8x128xf32, #tpu.memory_space<vmem>>, vector<8x128xf32>
    %cst_7 = arith.constant dense<0.000000e+00> : vector<2x8xf32>
    %6 = tpu.matmul %3, %4, %cst_7 {dimension_numbers = #tpu.dot_dimension_numbers<[1], [1], [0], [0], [0, 0, 1, 0], [], []>} : vector<2x128xf32>, vector<8x128xf32>, vector<2x8xf32> -> vector<2x8xf32>
    %cst_8 = arith.constant 0.000000e+00 : f32
    %7 = vector.broadcast %cst_8 : f32 to vector<2x8xf32>
    %8 = arith.maximumf %6, %7 : vector<2x8xf32>
    %cst_9 = arith.constant dense<0.000000e+00> : vector<2x128xf32>
    %9 = tpu.matmul %8, %5, %cst_9 {dimension_numbers = #tpu.dot_dimension_numbers<[1], [0], [0], [1], [0, 0, 1, 1], [], []>} : vector<2x8xf32>, vector<8x128xf32>, vector<2x128xf32> -> vector<2x128xf32>
    %10 = arith.negf %9 : vector<2x128xf32>
    %11 = math.exp %10 : vector<2x128xf32>
    %cst_10 = arith.constant 1.000000e+00 : f32
    %12 = vector.broadcast %cst_10 : f32 to vector<2x128xf32>
    %13 = arith.addf %12, %11 : vector<2x128xf32>
    %14 = arith.divf %12, %13 : vector<2x128xf32>
    %c0_11 = arith.constant 0 : index
    %c0_12 = arith.constant 0 : index
    %c0_13 = arith.constant 0 : index
    %15 = vector.load %arg1[%c0_11, %c0_12, %c0_13] : memref<2x128x256xf32, #tpu.memory_space<vmem>>, vector<2x128x256xf32>
    %16 = vector.shape_cast %14 : vector<2x128xf32> to vector<2x128x1xf32>
    %17 = vector.broadcast %16 : vector<2x128x1xf32> to vector<2x128x256xf32>
    %18 = arith.mulf %15, %17 : vector<2x128x256xf32>
    %c0_14 = arith.constant 0 : index
    %c0_15 = arith.constant 0 : index
    %c0_16 = arith.constant 0 : index
    %19 = vector.load %arg4[%c0_14, %c0_15, %c0_16] : memref<2x128x256xf32, #tpu.memory_space<vmem>>, vector<2x128x256xf32>
    tpu.vector_store %arg4[%c0_14, %c0_15, %c0_16], %18 {strides = array<i32>} : memref<2x128x256xf32, #tpu.memory_space<vmem>>, vector<2x128x256xf32>,
    return
  }
  func.func @transform_0(%arg0: i32) -> (i32, i32, i32) {
    %c0_i32 = arith.constant 0 : i32
    %c0_i32_0 = arith.constant 0 : i32
    %c0_i32_1 = arith.constant 0 : i32
    return %arg0, %c0_i32, %c0_i32_0 : i32, i32, i32
  }
  func.func @transform_1(%arg0: i32) -> (i32, i32) {
    %c0_i32 = arith.constant 0 : i32
    %c0_i32_0 = arith.constant 0 : i32
    %c0_i32_1 = arith.constant 0 : i32
    return %c0_i32, %c0_i32_0 : i32, i32
  }
  func.func @transform_2(%arg0: i32) -> (i32, i32) {
    %c0_i32 = arith.constant 0 : i32
    %c0_i32_0 = arith.constant 0 : i32
    %c0_i32_1 = arith.constant 0 : i32
    return %c0_i32, %c0_i32_0 : i32, i32
  }
  func.func @transform_3(%arg0: i32) -> (i32, i32, i32) {
    %c0_i32 = arith.constant 0 : i32
    %c0_i32_0 = arith.constant 0 : i32
    %c0_i32_1 = arith.constant 0 : i32
    return %arg0, %c0_i32, %c0_i32_0 : i32, i32, i32
  }
}

</mosaic_0001>

<bundles_post_ra>
// kernel: tpu_custom_call.1
= control target key start
LH: loop header
LB: loop body
LE: loop exit
PB: predicated region body
PF: predicated region fallthrough
CT: control target
= control target key end

     0   :  { %8 = vsyncpa [#allocation3], 0  ;;  %s2220_s0 = inlined_call_operand.hbm [shape: f32[4,128,256], index: 0, kind: input, shape index: {}]   ;;  %s2221_s1 = inlined_call_operand.hbm [shape: f32[8,128], index: 1, kind: input, shape index: {}]   ;;  %s2222_s2 = inlined_call_operand.hbm [shape: f32[8,128], index: 2, kind: input, shape index: {}]   ;;  %s2223_s3 = inlined_call_operand.hbm [shape: f32[4,128,256], index: 3, kind: output, shape index: {}]  }
   0x1   :  { %10 = vsyncpa [#allocation3 + $0x1], 0 }
   0x2   :  { %11 = vsyncpa [#allocation6], 0 }
   0x3   :  { %12 = vsyncpa [#allocation4], 0 }
   0x4   :  { %14 = vsyncpa [#allocation4 + $0x1], 0  ;;  %s1461_s12 = smov 0   ;;  %s1463_s13 = smov 0  }
   0x5   :  { %s1465_s14 = smov 0   ;;  %s1467_s15 = smov 0  }
   0x6 LB: > { %s1482_s16 = sadd.s32 4294967295, %s1429_s15   ;;  %s1156_s17 = sadd.s32 4294967294, %s1429_s15   ;;  %s1429_s15 = sphi %s1467_s15, %s2404_s15   ;;  %s1425_s14 = sphi %s1465_s14, %s2403_s14   ;;  %s1421_s13 = sphi %s1463_s13, %s2402_s13   ;;  %s1417_s12 = sphi %s1461_s12, %s2401_s12  }
   0x7   : > { %s1486_s18 = sadd.s32 1, %s1429_s15   ;;  %s27_s19 = sadd.s32 1, %s1425_s14 }
   0x8   : > { %s24_s20 = ssub.s32 %s1429_s15, %s1486_s18  ;;  %p34_p0 = scmp.ne.s32.totalorder %s1425_s14, %s1421_s13 }
   0x9   : > { %p25_p1 = scmp.eq.s32.totalorder %s24_s20, 0  ;;  %p35_p2 = scmp.eq.s32.totalorder %s1429_s15, 0 }
   0xa   : > { %p40_p3 = scmp.ne.s32.totalorder %s1421_s13, %s1417_s12  ;;  %p2224_p4 = scmp.eq.s32.totalorder %s1482_s16, 0 }
   0xb   : > { %s1498_s21 = scalar_select %p25_p1, %s1425_s14, %s27_s19  }
   0xc   : > { %p1500_p5 = por %p35_p2, %p34_p0  ;;  %p1506_p6 = por %p2224_p4, %p40_p3 }
   0xd   : > { %p106_p7 = scmp.eq.s32.totalorder %s1482_s16, 1  ;;  %p112_p8 = scmp.eq.s32.totalorder %s1156_s17, 1 }
   0xe   : > { %s2282_s23 = scalar_select %p1506_p6, 1, 0 }
   0xf   : > { %p1157_p9 = scmp.ge.s32.totalorder %s1429_s15, 1  ;;  %p119_p10 = scmp.lt.s32.totalorder %s1429_s15, 3 }
  0x10   : > { %p1513_p11 = por %p106_p7, %p34_p0  ;;  %p1517_p12 = por %p112_p8, %p40_p3 }
  0x11   : > { %p1521_p13 = pnand %p1157_p9, %p119_p10  ;;  %s1431_s27 = smov [#allocation5]  }
  0x12   : > { %s2283_s24 = scalar_select %p1513_p11, 1, 0 }
  0x13   : > { %s2284_s25 = scalar_select %p1517_p12, 1, 0 }
  0x14   : > { %s2285_s26 = scalar_select %p1521_p13, 1, 0 }
  0x15   : > { %p1208_p2 = pneg %p1521_p13  ;;  %s132_s28 = sshll.u32 %s1431_s27, 4  ;;  %s133_s28 = int_to_ptr.vmem [resolvable:$true] %s132_s28 }
  0x16   : > { %p1225_p4 = scmp.lt.s32.totalorder %s1429_s15, 2  ;;  %p2286_p0 = scmp.eq.s32.totalorder %s1482_s16, 0 }
  0x17   : > { %s1432_s4 = smov [#allocation7]   ;;  %s1273_s8 = scalar_lea.hbm %s2221_s1, 128 }
  0x18   : > { %p1531_p7 = pnand %p1208_p2, %p2286_p0  ;;  %p1537_p3 = pnand %p1225_p4, %p1500_p5 }
  0x19   : > { %s143_s5 = sshll.u32 %s1432_s4, 4  ;;  %p1274_p8 = scmp.ne.s32.totalorder %s2221_s1, %s1273_s8  ;;  %s1541_s5 = int_to_ptr.vmem [resolvable:$true] %s143_s5 }
  0x1a   : > { %s2288_s30 = scalar_select %p1537_p3, 1, 0 }
  0x1b   : > { %p1275_p9 = pneg %p1531_p7  ;;  %p1280_p10 = scmp.lt.u32.totalorder %s1273_s8, %s2221_s1 }
  0x1d   : > { %p1276_p4 = pnand %p1275_p9, %p1274_p8 }
  0x1f   : > { %p1277_p5 = pneg %p1276_p4 }
  0x21   : > { %p1282_p2 = pnand %p1280_p10, %p1277_p5 }
  0x23   : > { %1285 = shalt.err (!%p1282_p2)
}
  0x24   : > { %s1286_s19 = scalar_lea.vmem %s133_s28, 128  ;;  %p1294_p11 = scmp.lt.s32.totalorder %s133_s28, %s133_s28 }
  0x25   : > { %p1287_p0 = scmp.ne.s32.totalorder %s133_s28, %s1286_s19  ;;  %p1295_p6 = scmp.lt.s32.totalorder %s1286_s19, %s1286_s19 }
  0x27   : > { %p1289_p1 = pnand %p1287_p0, %p1275_p9  ;;  %p1296_p13 = por %p1295_p6, %p1294_p11 }
  0x29   : > { %p1290_p12 = pneg %p1289_p1 }
  0x2b   : > { %p1297_p3 = pnand %p1296_p13, %p1290_p12 }
  0x2d   : > { %1300 = shalt.err (!%p1297_p3)
}
  0x2e   : > { %1211 = dma.hbm_to_vmem [thread:$0]  (!%p1531_p7), %s2221_s1, 128, %s133_s28, [#allocation6]  }
  0x2f   : > { %s154_s27 = sand.u32 1, %s1425_s14   ;;  %s1301_s7 = scalar_lea.hbm %s2222_s2, 128 }
  0x30   : > { %p1302_p1 = scmp.ne.s32.totalorder %s2222_s2, %s1301_s7  ;;  %p1308_p12 = scmp.lt.u32.totalorder %s1301_s7, %s2222_s2 }
  0x32   : > { %p1304_p6 = pnand %p1302_p1, %p1275_p9 }
  0x34   : > { %p1305_p11 = pneg %p1304_p6 }
  0x36   : > { %p1310_p13 = pnand %p1308_p12, %p1305_p11 }
  0x38   : > { %1313 = shalt.err (!%p1310_p13)
}
  0x39   : > { %s1314_s28 = scalar_lea.vmem %s1541_s5, 128  ;;  %p1322_p5 = scmp.lt.s32.totalorder %s1541_s5, %s1541_s5 }
  0x3a   : > { %p1315_p3 = scmp.ne.s32.totalorder %s1541_s5, %s1314_s28  ;;  %p1323_p10 = scmp.lt.s32.totalorder %s1314_s28, %s1314_s28 }
  0x3c   : > { %p1317_p8 = pnand %p1315_p3, %p1275_p9  ;;  %p1324_p2 = por %p1323_p10, %p1322_p5 }
  0x3e   : > { %p1318_p4 = pneg %p1317_p8 }
  0x40   : > { %p1325_p0 = pnand %p1324_p2, %p1318_p4 }
  0x42   : > { %1328 = shalt.err (!%p1325_p0)
}
  0x43   : > { %1214 = dma.hbm_to_vmem [thread:$0]  (!%p1531_p7), %s2222_s2, 128, %s1541_s5, [#allocation6]  }
  0x44   : > { %s1161_s20 = sshll.u32 %s154_s27, 9  ;;  %s1179_s22 = sshll.u32 %s1429_s15, 13 }
  0x45   : > { %s1595_s7 = scalar_lea.hbm %s2220_s0, %s1179_s22  ;;  %s158_s29 = scalar_lea.vmem [#allocation2], %s1161_s20 }
  0x46   : > { %s166_s8 = sshll.u32 %s158_s29, 4  ;;  %s1599_s9 = scalar_lea.sflag [#allocation3], %s154_s27  ;;  %s1597_s8 = int_to_ptr.vmem [resolvable:$true] %s166_s8 }
  0x47   : > { %s1329_s10 = scalar_lea.hbm %s1595_s7, 8192  ;;  %p2289_p7 = scmp.ne.s32.totalorder %s2288_s30, 0 }
  0x48   : > { %p1330_p9 = scmp.ne.s32.totalorder %s1595_s7, %s1329_s10  ;;  %s1334_s28 = scalar_lea.hbm %s2220_s0, 16384 }
  0x49   : > { %p1331_p1 = pneg %p2289_p7  ;;  %p1335_p12 = scmp.lt.u32.totalorder %s1595_s7, %s2220_s0 }
  0x4a   : > { %p1336_p13 = scmp.lt.u32.totalorder %s1334_s28, %s1329_s10  ;;  %p1338_p8 = scmp.lt.u32.totalorder %s1329_s10, %s1595_s7 }
  0x4b   : > { %p1332_p6 = pnand %p1331_p1, %p1330_p9 }
  0x4c   : > { %p1337_p3 = por %p1336_p13, %p1335_p12 }
  0x4d   : > { %p1333_p11 = pneg %p1332_p6 }
  0x4e   : > { %p1339_p4 = por %p1338_p8, %p1337_p3 }
  0x50   : > { %p1340_p5 = pnand %p1339_p4, %p1333_p11 }
  0x52   : > { %1343 = shalt.err (!%p1340_p5)
}
  0x53   : > { %s1344_s27 = scalar_lea.vmem %s1597_s8, 8192  ;;  %s1433_s20 = smov [#allocation2]  }
  0x54   : > { %p1345_p10 = scmp.ne.s32.totalorder %s1597_s8, %s1344_s27  ;;  %s1349_s22 = sshll.u32 %s1433_s20, 4  ;;  %s1350_s22 = int_to_ptr.vmem [resolvable:$false] %s1349_s22 }
  0x55   : > { %s1351_s4 = scalar_lea.vmem %s1350_s22, 16384  ;;  %p1352_p9 = scmp.lt.s32.totalorder %s1597_s8, %s1350_s22 }
  0x56   : > { %p1347_p2 = pnand %p1345_p10, %p1331_p1  ;;  %p1353_p6 = scmp.lt.s32.totalorder %s1351_s4, %s1344_s27 }
  0x58   : > { %p1348_p0 = pneg %p1347_p2  ;;  %p1354_p12 = por %p1353_p6, %p1352_p9 }
  0x5a   : > { %p1355_p13 = pnand %p1354_p12, %p1348_p0 }
  0x5c   : > { %1358 = shalt.err (!%p1355_p13)
}
  0x5d   : > { %s1434_s6 = smov 256   ;;  %s1435_s29 = smov 16  }
  0x5e   : > { %1218 = dma.hbm_to_vmem [thread:$0]  (!%p2289_p7), %s1595_s7, 8192, %s1597_s8, %s1599_s9, %s1434_s6, %s1434_s6, %s1435_s29  }
  0x5f   : > { %p2290_p1 = scmp.ne.s32.totalorder %s2285_s26, 0 }
  0x61   : > { %178 = sbr.rel (%p2290_p1) target bundleno = 973 (0x3cd), region = 32 }
  0x68   : > { %s1630_s10 = sand.u32 1, %s1421_s13   ;;  %p2291_p11 = scmp.ne.s32.totalorder %s2282_s23, 0 }
  0x69   : > { %s1166_s5 = sshll.u32 %s1630_s10, 9  ;;  %s181_s11 = scalar_lea.sflag [#allocation3], %s1630_s10 }
  0x6a   : > { %s1636_s28 = scalar_lea.vmem [#allocation2], %s1166_s5 }
  0x6b   : > { %1404 = dma.done.wait (%p2291_p11), %s181_s11, 8192  }
  0x6c   : > { %1406 = vsyncadd (%p2291_p11), %s181_s11, 4294959104  ;;  %p2292_p7 = scmp.eq.s32.totalorder %s1482_s16, 0 }
  0x6e   : > { %1408 = dma.done.wait (%p2292_p7), [#allocation6], 256   ;;  %p2293_p3 = pmov %p2292_p7 }
  0x6f   : > { %v1647_v0 = vld [vmem:[%s1636_s28 + $0x100] sm:$0xff]  ;;  %v1650_v1 = vld [vmem:[%s1636_s28 + $0x108] sm:$0xff]  ;;  %v1661_v5 = vld [vmem:[%s1636_s28 + $0x110] sm:$0xff]  ;;  %vm1437_vm0 = vmmov 0   ;;  %vm454_vm1 = vcmask 130112   ;;  %vm461_vm2 = vcmask 195712  }
  0x70   : > { %1410 = vsyncadd (%p2293_p3), [#allocation6], 4294967040  ;;  %2294 = vst [vmem:[#allocation12_spill] sm:$0xff] %v1647_v0  ;;  %v1653_v2 = vld [vmem:[%s1636_s28] sm:$0xff]  ;;  %v329_v3 = vadd.f32 %v1650_v1, %v1647_v0  ;;  %v1658_v4 = vld [vmem:[%s1636_s28 + $0x8] sm:$0xff]  ;;  %vm468_vm3 = vcmask 261312  }
  0x71   : > { %2295 = vst [vmem:[#allocation13_spill] sm:$0xff] %v1650_v1  ;;  %2296 = vst [vmem:[#allocation14_spill] sm:$0xff] %v1661_v5  ;;  %v1664_v6 = vld [vmem:[%s1636_s28 + $0x118] sm:$0xff]  ;;  %v281_v7 = vadd.f32 %v1658_v4, %v1653_v2  ;;  %v1669_v8 = vld [vmem:[%s1636_s28 + $0x10] sm:$0xff]  ;;  %vm475_vm4 = vcmask 326912   ;;  %vm482_vm5 = vcmask 392512  }
  0x72   : > { %2297 = vst [vmem:[#allocation15_spill] sm:$0xff] %v1664_v6  ;;  %v1672_v9 = vld [vmem:[%s1636_s28 + $0x18] sm:$0xff]  ;;  %330 = vadd.xlane.f32.xlu1 %v329_v3  ;;  %v332_v10 = vadd.f32 %v1664_v6, %v1661_v5  ;;  %v1679_v12 = vld [vmem:[%s1636_s28 + $0x120] sm:$0xff]  ;;  %v1682_v13 = vld [vmem:[%s1636_s28 + $0x128] sm:$0xff]  ;;  %vm489_vm6 = vcmask 458112   ;;  %vm496_vm7 = vcmask 523712  }
  0x73   : > { %282 = vadd.xlane.f32.xlu0 %v281_v7  ;;  %v284_v11 = vadd.f32 %v1672_v9, %v1669_v8  ;;  %2298 = vst [vmem:[#allocation16_spill] sm:$0xff] %v1679_v12  ;;  %2299 = vst [vmem:[#allocation17_spill] sm:$0xff] %v1682_v13  ;;  %v1685_v14 = vld [vmem:[%s1636_s28 + $0x20] sm:$0xff]  ;;  %v1688_v15 = vld [vmem:[%s1636_s28 + $0x28] sm:$0xff]  ;;  %v335_v16 = vadd.f32 %v1682_v13, %v1679_v12  ;;  %vm503_vm8 = vcmask 589312   ;;  %vm510_vm9 = vcmask 654912  }
  0x74   : > { %v287_v17 = vadd.f32 %v1688_v15, %v1685_v14  ;;  %v1695_v18 = vld [vmem:[%s1636_s28 + $0x130] sm:$0xff]  ;;  %v1698_v19 = vld [vmem:[%s1636_s28 + $0x138] sm:$0xff]  ;;  %v1711_v24 = vld [vmem:[%s1636_s28 + $0x140] sm:$0xff]  ;;  %vm517_vm10 = vcmask 720512   ;;  %vm524_vm11 = vcmask 786112   ;;  %vm531_vm12 = vcmask 851712  }
  0x75   : > { %2300 = vst [vmem:[#allocation18_spill] sm:$0xff] %v1695_v18  ;;  %2301 = vst [vmem:[#allocation19_spill] sm:$0xff] %v1698_v19  ;;  %v1701_v20 = vld [vmem:[%s1636_s28 + $0x30] sm:$0xff]  ;;  %v1704_v21 = vld [vmem:[%s1636_s28 + $0x38] sm:$0xff]  ;;  %v338_v22 = vadd.f32 %v1698_v19, %v1695_v18  ;;  %vm538_vm13 = vcmask 917312   ;;  %vm545_vm14 = vcmask 982912  }
  0x76   : > { %333 = vadd.xlane.f32.xlu1 %v332_v10  ;;  %v290_v23 = vadd.f32 %v1704_v21, %v1701_v20  ;;  %2302 = vst [vmem:[#allocation20_spill] sm:$0xff] %v1711_v24  ;;  %v1714_v25 = vld [vmem:[%s1636_s28 + $0x148] sm:$0xff]  ;;  %v1717_v26 = vld [vmem:[%s1636_s28 + $0x40] sm:$0xff]  ;;  %v1727_v30 = vld [vmem:[%s1636_s28 + $0x150] sm:$0xff]  ;;  %vm552_vm15 = vcmask 1048512   ;;  %s2043_s23 = scalar_lea.vmem [#allocation8], %s1166_s5 }
  0x77   : > { %285 = vadd.xlane.f32.xlu0 %v284_v11  ;;  %2303 = vst [vmem:[#allocation21_spill] sm:$0xff] %v1714_v25  ;;  %v1720_v27 = vld [vmem:[%s1636_s28 + $0x48] sm:$0xff]  ;;  %v341_v28 = vadd.f32 %v1714_v25, %v1711_v24  ;;  %2304 = vst [vmem:[#allocation22_spill] sm:$0xff] %v1727_v30  ;;  %v1730_v31 = vld [vmem:[%s1636_s28 + $0x158] sm:$0xff]  ;;  %s1181_s26 = sshll.u32 %s1482_s16, 13  ;;  %s1064_s30 = sshll.u32 %s2043_s23, 4  ;;  %s2172_s30 = int_to_ptr.vmem [resolvable:$true] %s1064_s30 }
  0x78   : > { %v293_v29 = vadd.f32 %v1720_v27, %v1717_v26  ;;  %2305 = vst [vmem:[#allocation23_spill] sm:$0xff] %v1730_v31  ;;  %v1733_v32 = vld [vmem:[%s1636_s28 + $0x50] sm:$0xff]  ;;  %v1736_v33 = vld [vmem:[%s1636_s28 + $0x58] sm:$0xff]  ;;  %v344_v34 = vadd.f32 %v1730_v31, %v1727_v30  ;;  %v1743_v36 = vld [vmem:[%s1636_s28 + $0x160] sm:$0xff]  ;;  %s2170_s9 = scalar_lea.hbm %s2223_s3, %s1181_s26  ;;  %s1050_s16 = scalar_lea.sflag [#allocation4], %s1630_s10 }
  0x79   : > { %2306 = vst [vmem:[#allocation24_spill] sm:$0xff] %v1733_v32  ;;  %2307 = vst [vmem:[#allocation25_spill] sm:$0xff] %v1736_v33  ;;  %v296_v35 = vadd.f32 %v1736_v33, %v1733_v32  ;;  %v1746_v37 = vld [vmem:[%s1636_s28 + $0x168] sm:$0xff]  ;;  %v1749_v38 = vld [vmem:[%s1636_s28 + $0x60] sm:$0xff]  ;;  %s1359_s17 = scalar_lea.vmem %s2172_s30, 8192  ;;  %p2398_p4 = scmp.ne.s32.totalorder %s2283_s24, 0 }
  0x7a   : > { %336 = vadd.xlane.f32.xlu1 %v335_v16  ;;  %2308 = vst [vmem:[#allocation26_spill] sm:$0xff] %v1743_v36  ;;  %2309 = vst [vmem:[#allocation27_spill] sm:$0xff] %v1746_v37  ;;  %v1752_v39 = vld [vmem:[%s1636_s28 + $0x68] sm:$0xff]  ;;  %v347_v40 = vadd.f32 %v1746_v37, %v1743_v36  ;;  %v1759_v42 = vld [vmem:[%s1636_s28 + $0x170] sm:$0xff]  ;;  %p1360_p8 = scmp.ne.s32.totalorder %s2172_s30, %s1359_s17  ;;  %s1438_s19 = smov [#allocation8]  }
  0x7b   : > { %288 = vadd.xlane.f32.xlu0 %v287_v17  ;;  %v299_v41 = vadd.f32 %v1752_v39, %v1749_v38  ;;  %2310 = vst [vmem:[#allocation28_spill] sm:$0xff] %v1759_v42  ;;  %v1762_v43 = vld [vmem:[%s1636_s28 + $0x178] sm:$0xff]  ;;  %v1765_v44 = vld [vmem:[%s1636_s28 + $0x70] sm:$0xff]  ;;  %v1775_v48 = vld [vmem:[%s1636_s28 + $0x180] sm:$0xff]  ;;  %s1363_s27 = sshll.u32 %s1438_s19, 4  ;;  %s1364_s27 = int_to_ptr.vmem [resolvable:$false] %s1363_s27 }
  0x7c   : > { %2311 = vst [vmem:[#allocation29_spill] sm:$0xff] %v1762_v43  ;;  %2312 = vst [vmem:[#allocation30_spill] sm:$0xff] %v1765_v44  ;;  %v1768_v45 = vld [vmem:[%s1636_s28 + $0x78] sm:$0xff]  ;;  %v350_v46 = vadd.f32 %v1762_v43, %v1759_v42  ;;  %v1778_v49 = vld [vmem:[%s1636_s28 + $0x188] sm:$0xff]  ;;  %p1361_p5 = pnand %p1360_p8, %p2398_p4  ;;  %s1365_s20 = scalar_lea.vmem %s1364_s27, 16384 }
  0x7d   : > { %2313 = vst [vmem:[#allocation31_spill] sm:$0xff] %v1768_v45  ;;  %v302_v47 = vadd.f32 %v1768_v45, %v1765_v44  ;;  %2314 = vst [vmem:[#allocation32_spill] sm:$0xff] %v1775_v48  ;;  %v1781_v50 = vld [vmem:[%s1636_s28 + $0x80] sm:$0xff]  ;;  %v1784_v51 = vld [vmem:[%s1636_s28 + $0x88] sm:$0xff]  ;;  %v353_v52 = vadd.f32 %v1778_v49, %v1775_v48  ;;  %p1366_p2 = scmp.lt.s32.totalorder %s2172_s30, %s1364_s27  ;;  %p1367_p0 = scmp.lt.s32.totalorder %s1365_s20, %s1359_s17 }
  0x7e   : > { %339 = vadd.xlane.f32.xlu1 %v338_v22  ;;  %2315 = vst [vmem:[#allocation33_spill] sm:$0xff] %v1778_v49  ;;  %2316 = vst [vmem:[#allocation34_spill] sm:$0xff] %v1781_v50  ;;  %v305_v53 = vadd.f32 %v1784_v51, %v1781_v50  ;;  %v1791_v54 = vld [vmem:[%s1636_s28 + $0x190] sm:$0xff]  ;;  %v1794_v55 = vld [vmem:[%s1636_s28 + $0x198] sm:$0xff]  ;;  %p1362_p10 = pneg %p1361_p5 }
  0x7f   : > { %291 = vadd.xlane.f32.xlu0 %v290_v23  ;;  %2317 = vst [vmem:[#allocation35_spill] sm:$0xff] %v1784_v51  ;;  %2318 = vst [vmem:[#allocation36_spill] sm:$0xff] %v1791_v54  ;;  %v1797_v56 = vld [vmem:[%s1636_s28 + $0x90] sm:$0xff]  ;;  %v1800_v57 = vld [vmem:[%s1636_s28 + $0x98] sm:$0xff]  ;;  %v356_v58 = vadd.f32 %v1794_v55, %v1791_v54  ;;  %p1368_p9 = por %p1367_p0, %p1366_p2 }
  0x80   : > { %2319 = vst [vmem:[#allocation37_spill] sm:$0xff] %v1794_v55  ;;  %2320 = vst [vmem:[#allocation38_spill] sm:$0xff] %v1797_v56  ;;  %v308_v59 = vadd.f32 %v1800_v57, %v1797_v56  ;;  %v1807_v60 = vld [vmem:[%s1636_s28 + $0x1a0] sm:$0xff]  ;;  %v1810_v61 = vld [vmem:[%s1636_s28 + $0x1a8] sm:$0xff] }
  0x81   : > { %2321 = vst [vmem:[#allocation39_spill] sm:$0xff] %v1800_v57  ;;  %2322 = vst [vmem:[#allocation40_spill] sm:$0xff] %v1807_v60  ;;  %v1813_v62 = vld [vmem:[%s1636_s28 + $0xa0] sm:$0xff]  ;;  %v1816_v63 = vld [vmem:[%s1636_s28 + $0xa8] sm:$0xff]  ;;  %v359_v3 = vadd.f32 %v1810_v61, %v1807_v60  ;;  %p1369_p6 = pnand %p1368_p9, %p1362_p10 }
  0x82   : > { %342 = vadd.xlane.f32.xlu1 %v341_v28  ;;  %2323 = vst [vmem:[#allocation41_spill] sm:$0xff] %v1810_v61  ;;  %2324 = vst [vmem:[#allocation42_spill] sm:$0xff] %v1813_v62  ;;  %v311_v7 = vadd.f32 %v1816_v63, %v1813_v62  ;;  %v1823_v10 = vld [vmem:[%s1636_s28 + $0x1b0] sm:$0xff]  ;;  %v1826_v11 = vld [vmem:[%s1636_s28 + $0x1b8] sm:$0xff] }
  0x83   : > { %294 = vadd.xlane.f32.xlu0 %v293_v29  ;;  %2325 = vst [vmem:[#allocation43_spill] sm:$0xff] %v1816_v63  ;;  %2326 = vst [vmem:[#allocation44_spill] sm:$0xff] %v1823_v10  ;;  %v1829_v16 = vld [vmem:[%s1636_s28 + $0xb0] sm:$0xff]  ;;  %v1832_v17 = vld [vmem:[%s1636_s28 + $0xb8] sm:$0xff]  ;;  %v362_v22 = vadd.f32 %v1826_v11, %v1823_v10 }
  0x84   : > { %2327 = vst [vmem:[#allocation45_spill] sm:$0xff] %v1826_v11  ;;  %2328 = vst [vmem:[#allocation46_spill] sm:$0xff] %v1829_v16  ;;  %v314_v23 = vadd.f32 %v1832_v17, %v1829_v16  ;;  %v1839_v28 = vld [vmem:[%s1636_s28 + $0x1c0] sm:$0xff]  ;;  %v1842_v29 = vld [vmem:[%s1636_s28 + $0x1c8] sm:$0xff] }
  0x85   : > { %2329 = vst [vmem:[#allocation47_spill] sm:$0xff] %v1832_v17  ;;  %2330 = vst [vmem:[#allocation48_spill] sm:$0xff] %v1839_v28  ;;  %v1896_v10 = vld [vmem:[%s1636_s28 + $0xf8] sm:$0xff] }
  0x86   : > { %345 = vadd.xlane.f32.xlu1 %v344_v34  ;;  %2331 = vst [vmem:[#allocation49_spill] sm:$0xff] %v1842_v29  ;;  %v1845_v34 = vld [vmem:[%s1636_s28 + $0xc0] sm:$0xff]  ;;  %2345 = vst [vmem:[#allocation63_spill] sm:$0xff] %v1896_v10 }
  0x87   : > { %297 = vadd.xlane.f32.xlu0 %v296_v35  ;;  %2332 = vst [vmem:[#allocation50_spill] sm:$0xff] %v1845_v34  ;;  %v1848_v35 = vld [vmem:[%s1636_s28 + $0xc8] sm:$0xff] }
  0x88   : > { %2333 = vst [vmem:[#allocation51_spill] sm:$0xff] %v1848_v35 }
  0x8a   : > { %348 = vadd.xlane.f32.xlu1 %v347_v40  ;;  %v365_v40 = vadd.f32 %v1842_v29, %v1839_v28 }
  0x8b   : > { %300 = vadd.xlane.f32.xlu0 %v299_v41  ;;  %v317_v41 = vadd.f32 %v1848_v35, %v1845_v34 }
  0x8e   : > { %351 = vadd.xlane.f32.xlu1 %v350_v46  ;;  %v1855_v46 = vld [vmem:[%s1636_s28 + $0x1d0] sm:$0xff] }
  0x8f   : > { %303 = vadd.xlane.f32.xlu0 %v302_v47  ;;  %2334 = vst [vmem:[#allocation52_spill] sm:$0xff] %v1855_v46  ;;  %v1858_v47 = vld [vmem:[%s1636_s28 + $0x1d8] sm:$0xff] }
  0x90   : > { %2335 = vst [vmem:[#allocation53_spill] sm:$0xff] %v1858_v47 }
  0x92   : > { %354 = vadd.xlane.f32.xlu1 %v353_v52  ;;  %v1861_v52 = vld [vmem:[%s1636_s28 + $0xd0] sm:$0xff] }
  0x93   : > { %306 = vadd.xlane.f32.xlu0 %v305_v53  ;;  %2336 = vst [vmem:[#allocation54_spill] sm:$0xff] %v1861_v52  ;;  %v1864_v53 = vld [vmem:[%s1636_s28 + $0xd8] sm:$0xff] }
  0x94   : > { %2337 = vst [vmem:[#allocation55_spill] sm:$0xff] %v1864_v53 }
  0x96   : > { %357 = vadd.xlane.f32.xlu1 %v356_v58  ;;  %v368_v58 = vadd.f32 %v1858_v47, %v1855_v46  ;;  %v1890_v47 = vld [vmem:[%s1636_s28 + $0x1f8] sm:$0xff]  ;;  %v1893_v46 = vld [vmem:[%s1636_s28 + $0xf0] sm:$0xff] }
  0x97   : > { %309 = vadd.xlane.f32.xlu0 %v308_v59  ;;  %v320_v59 = vadd.f32 %v1864_v53, %v1861_v52  ;;  %2343 = vst [vmem:[#allocation61_spill] sm:$0xff] %v1890_v47  ;;  %2344 = vst [vmem:[#allocation62_spill] sm:$0xff] %v1893_v46 }
  0x9a   : > { %360 = vadd.xlane.f32.xlu1 %v359_v3  ;;  %v1871_v3 = vld [vmem:[%s1636_s28 + $0x1e0] sm:$0xff] }
  0x9b   : > { %312 = vadd.xlane.f32.xlu0 %v311_v7  ;;  %2338 = vst [vmem:[#allocation56_spill] sm:$0xff] %v1871_v3  ;;  %v1874_v7 = vld [vmem:[%s1636_s28 + $0x1e8] sm:$0xff] }
  0x9c   : > { %2339 = vst [vmem:[#allocation57_spill] sm:$0xff] %v1874_v7  ;;  %v371_v11 = vadd.f32 %v1874_v7, %v1871_v3  ;;  %v409_v7 = vld [vmem:[#allocation5] sm:$0xff] }
  0x9e   : > { %363 = vadd.xlane.f32.xlu1 %v362_v22  ;;  %v1877_v22 = vld [vmem:[%s1636_s28 + $0xe0] sm:$0xff] }
  0x9f   : > { %315 = vadd.xlane.f32.xlu0 %v314_v23  ;;  %2340 = vst [vmem:[#allocation58_spill] sm:$0xff] %v1877_v22  ;;  %v1880_v23 = vld [vmem:[%s1636_s28 + $0xe8] sm:$0xff] }
  0xa0   : > { %2341 = vst [vmem:[#allocation59_spill] sm:$0xff] %v1880_v23 }
  0xa2   : > { %366 = vadd.xlane.f32.xlu1 %v365_v40  ;;  %v323_v40 = vadd.f32 %v1880_v23, %v1877_v22 }
  0xa3   : > { %318 = vadd.xlane.f32.xlu0 %v317_v41  ;;  %v1887_v41 = vld [vmem:[%s1636_s28 + $0x1f0] sm:$0xff] }
  0xa4   : > { %2342 = vst [vmem:[#allocation60_spill] sm:$0xff] %v1887_v41  ;;  %v374_v29 = vadd.f32 %v1890_v47, %v1887_v41 }
  0xa6   : > { %369 = vadd.xlane.f32.xlu1 %v368_v58  ;;  %v326_v58 = vadd.f32 %v1896_v10, %v1893_v46 }
  0xa7   : > { %321 = vadd.xlane.f32.xlu0 %v320_v59  ;;  %v1436_v59 = vmov 0.0  }
  0xa8   : > { %1186 = vmatprep.subr.mxu0 %v1436_v59  ;;  %1191 = vmatprep.subr.mxu1 %v1436_v59 }
  0xa9   : > { %1187 = vmatpush3.xpose.msra.mxu0 %v409_v7  ;;  %1188 = vmatprep.mubr.msk.f32.mxu0 %vm1437_vm0, %v1436_v59  ;;  %v443_v7 = vlaneseq }
  0xaa   : > { %372 = vadd.xlane.f32.xlu1 %v371_v11  ;;  %1193 = vmatprep.mubr.msk.f32.mxu1 %vm1437_vm0, %v1436_v59  ;;  %vm633_vm0 = vcmask 1041409  }
  0xab   : > { %324 = vadd.xlane.f32.xlu0 %v323_v40  ;;  %v444_v48 = vand.u32 127, %v443_v7  ;;  %v1912_v31 = vshrl.u32 %v443_v7, 7 }
  0xad   : > { %v449_v30 = vadd.s32 4294967288, %v444_v48  ;;  %v456_v37 = vadd.s32 4294967280, %v444_v48  ;;  %v463_v19 = vadd.s32 4294967272, %v444_v48  ;;  %v470_v18 = vadd.s32 4294967264, %v444_v48 }
  0xae   : > { %375 = vadd.xlane.f32.xlu1 %v374_v29  ;;  %v477_v24 = vadd.s32 4294967256, %v444_v48  ;;  %v484_v6 = vadd.s32 4294967248, %v444_v48  ;;  %v491_v5 = vadd.s32 4294967240, %v444_v48  ;;  %v1919_v13 = vsub.s32 %v444_v48, %v1912_v31 }
  0xaf   : > { %327 = vadd.xlane.f32.xlu0 %v326_v58  ;;  %v498_v12 = vadd.s32 4294967232, %v444_v48  ;;  %v505_v10 = vadd.s32 4294967224, %v444_v48  ;;  %v512_v46 = vadd.s32 4294967216, %v444_v48  ;;  %v452_v7 = vsub.s32 %v449_v30, %v1912_v31 }
  0xb0   : > { %v1923_v1 = vsub.s32 %v456_v37, %v1912_v31  ;;  %v519_v53 = vadd.s32 4294967208, %v444_v48  ;;  %v1928_v52 = vsub.s32 %v463_v19, %v1912_v31  ;;  %v1931_v23 = vsub.s32 %v470_v18, %v1912_v31 }
  0xb1   : > { %v526_v17 = vadd.s32 4294967200, %v444_v48  ;;  %v1936_v30 = vsub.s32 %v477_v24, %v1912_v31  ;;  %v1939_v37 = vsub.s32 %v484_v6, %v1912_v31  ;;  %v1942_v16 = vsub.s32 %v491_v5, %v1912_v31 }
  0xb2   : > { %v533_v35 = vadd.s32 4294967192, %v444_v48  ;;  %v1945_v19 = vsub.s32 %v498_v12, %v1912_v31  ;;  %v1948_v18 = vsub.s32 %v505_v10, %v1912_v31  ;;  %v1951_v57 = vsub.s32 %v512_v46, %v1912_v31 }
  0xb3   : > { %v1954_v63 = vsub.s32 %v519_v53, %v1912_v31  ;;  %v540_v5 = vadd.s32 4294967184, %v444_v48  ;;  %v1957_v12 = vsub.s32 %v526_v17, %v1912_v31  ;;  %v547_v53 = vadd.s32 4294967176, %v444_v48 }
  0xb5   : > { %v1965_v17 = vsub.s32 %v540_v5, %v1912_v31 }
  0xff   : > { %v331_v3 = vpop.xlane.xlu1 %330 }
 0x100   : > { %v283_v28 = vpop.xlane.xlu0 %282  ;;  %v393_v62 = vmul.f32 0.00390625, %v331_v3 }
 0x101   : > { %v377_v10 = vmul.f32 0.00390625, %v283_v28 }
 0x102   : > { %v557_v28 = vrot.slane %v393_v62, %v1919_v13 }
 0x103   : > { %v334_v11 = vpop.xlane.xlu1 %333  ;;  %v448_v48 = vrot.slane %v377_v10, %v1919_v13 }
 0x104   : > { %v286_v55 = vpop.xlane.xlu0 %285  ;;  %v394_v34 = vmul.f32 0.00390625, %v334_v11 }
 0x105   : > { %v378_v24 = vmul.f32 0.00390625, %v286_v55  ;;  %v1960_v55 = vsub.s32 %v533_v35, %v1912_v31 }
 0x107   : > { %v337_v54 = vpop.xlane.xlu1 %336  ;;  %v453_v32 = vrot.slane %v378_v24, %v452_v7 }
 0x108   : > { %v289_v47 = vpop.xlane.xlu0 %288  ;;  %v395_v56 = vmul.f32 0.00390625, %v337_v54  ;;  %v561_v54 = vrot.slane %v394_v34, %v452_v7 }
 0x109   : > { %v379_v11 = vmul.f32 0.00390625, %v289_v47 }
 0x10a   : > { %v566_v3 = vrot.slane %v395_v56, %v1923_v1 }
 0x10b   : > { %v340_v40 = vpop.xlane.xlu1 %339 }
 0x10c   : > { %v292_v41 = vpop.xlane.xlu0 %291  ;;  %v396_v45 = vmul.f32 0.00390625, %v340_v40 }
 0x10d   : > { %v380_v51 = vmul.f32 0.00390625, %v292_v41 }
 0x10e   : > { %v571_v35 = vrot.slane %v396_v45, %v1928_v52  ;;  %v1979_v45 = vsub.s32 %v547_v53, %v1912_v31 }
 0x10f   : > { %v343_v61 = vpop.xlane.xlu1 %342  ;;  %v467_v56 = vrot.slane %v380_v51, %v1928_v52 }
 0x110   : > { %v295_v60 = vpop.xlane.xlu0 %294  ;;  %v397_v50 = vmul.f32 0.00390625, %v343_v61  ;;  %v460_v61 = vrot.slane %v379_v11, %v1923_v1 }
 0x111   : > { %v381_v46 = vmul.f32 0.00390625, %v295_v60 }
 0x112   : > { %v576_v41 = vrot.slane %v397_v50, %v1931_v23 }
 0x113   : > { %v346_v29 = vpop.xlane.xlu1 %345  ;;  %v474_v62 = vrot.slane %v381_v46, %v1931_v23 }
 0x114   : > { %v1902_v58 = vpop.xlane.xlu0 %297  ;;  %v398_v33 = vmul.f32 0.00390625, %v346_v29 }
 0x115   : > { %v382_v47 = vmul.f32 0.00390625, %v1902_v58  ;;  %v562_v58 = vsel %vm454_vm1, %v561_v54, %v557_v28 }
 0x116   : > { %v581_v1 = vrot.slane %v398_v33, %v1936_v30  ;;  %v567_v13 = vsel %vm461_vm2, %v566_v3, %v562_v58 }
 0x117   : > { %v1904_v43 = vpop.xlane.xlu1 %348  ;;  %v481_v51 = vrot.slane %v382_v47, %v1936_v30  ;;  %v572_v23 = vsel %vm468_vm3, %v571_v35, %v567_v13 }
 0x118   : > { %v1906_v42 = vpop.xlane.xlu0 %300  ;;  %v399_v34 = vmul.f32 0.00390625, %v1904_v43  ;;  %v455_v43 = vsel %vm454_vm1, %v453_v32, %v448_v48  ;;  %v577_v5 = vsel %vm475_vm4, %v576_v41, %v572_v23  ;;  %vm707_vm1 = vcmask 64512  }
 0x119   : > { %v383_v29 = vmul.f32 0.00390625, %v1906_v42  ;;  %v462_v52 = vsel %vm461_vm2, %v460_v61, %v455_v43  ;;  %v582_v10 = vsel %vm482_vm5, %v581_v1, %v577_v5 }
 0x11a   : > { %v586_v33 = vrot.slane %v399_v34, %v1939_v37  ;;  %v469_v32 = vsel %vm468_vm3, %v467_v56, %v462_v52 }
 0x11b   : > { %v1908_v49 = vpop.xlane.xlu1 %351  ;;  %v488_v30 = vrot.slane %v383_v29, %v1939_v37  ;;  %v476_v11 = vsel %vm475_vm4, %v474_v62, %v469_v32 }
 0x11c   : > { %v1910_v59 = vpop.xlane.xlu0 %303  ;;  %v400_v50 = vmul.f32 0.00390625, %v1908_v49 }
 0x11d   : > { %v384_v7 = vmul.f32 0.00390625, %v1910_v59  ;;  %v483_v59 = vsel %vm482_vm5, %v481_v51, %v476_v11 }
 0x11e   : > { %v591_v53 = vrot.slane %v400_v50, %v1942_v16 }
 0x11f   : > { %v1914_v36 = vpop.xlane.xlu1 %354  ;;  %v495_v28 = vrot.slane %v384_v7, %v1942_v16 }
 0x120   : > { %v1916_v25 = vpop.xlane.xlu0 %306  ;;  %v401_v49 = vmul.f32 0.00390625, %v1914_v36  ;;  %v587_v36 = vsel %vm489_vm6, %v586_v33, %v582_v10 }
 0x121   : > { %v385_v54 = vmul.f32 0.00390625, %v1916_v25  ;;  %v592_v58 = vsel %vm496_vm7, %v591_v53, %v587_v36 }
 0x122   : > { %v596_v25 = vrot.slane %v401_v49, %v1945_v19 }
 0x123   : > { %v1925_v0 = vpop.xlane.xlu1 %357  ;;  %v502_v41 = vrot.slane %v385_v54, %v1945_v19 }
 0x124   : > { %v1933_v22 = vpop.xlane.xlu0 %309  ;;  %v402_v46 = vmul.f32 0.00390625, %v1925_v0  ;;  %v490_v0 = vsel %vm489_vm6, %v488_v30, %v483_v59  ;;  %v597_v51 = vsel %vm503_vm8, %v596_v25, %v592_v58 }
 0x125   : > { %v386_v3 = vmul.f32 0.00390625, %v1933_v22  ;;  %v497_v1 = vsel %vm496_vm7, %v495_v28, %v490_v0 }
 0x126   : > { %v601_v22 = vrot.slane %v402_v46, %v1948_v18 }
 0x127   : > { %v361_v6 = vpop.xlane.xlu1 %360  ;;  %v509_v16 = vrot.slane %v386_v3, %v1948_v18  ;;  %v504_v18 = vsel %vm503_vm8, %v502_v41, %v497_v1 }
 0x128   : > { %v313_v44 = vpop.xlane.xlu0 %312  ;;  %v403_v47 = vmul.f32 0.00390625, %v361_v6  ;;  %v602_v23 = vsel %vm510_vm9, %v601_v22, %v597_v51 }
 0x129   : > { %v387_v61 = vmul.f32 0.00390625, %v313_v44 }
 0x12a   : > { %v606_v44 = vrot.slane %v403_v47, %v1951_v57 }
 0x12b   : > { %v364_v40 = vpop.xlane.xlu1 %363  ;;  %v516_v43 = vrot.slane %v387_v61, %v1951_v57  ;;  %v511_v57 = vsel %vm510_vm9, %v509_v16, %v504_v18 }
 0x12c   : > { %v316_v60 = vpop.xlane.xlu0 %315  ;;  %v404_v35 = vmul.f32 0.00390625, %v364_v40 }
 0x12d   : > { %v388_v48 = vmul.f32 0.00390625, %v316_v60  ;;  %v518_v30 = vsel %vm517_vm10, %v516_v43, %v511_v57  ;;  %v2348_v57 = vld [vmem:[#allocation34_spill] sm:$0xff] }
 0x12e   : > { %v611_v60 = vrot.slane %v404_v35, %v1954_v63 }
 0x12f   : > { %v367_v42 = vpop.xlane.xlu1 %366  ;;  %v523_v50 = vrot.slane %v388_v48, %v1954_v63 }
 0x130   : > { %v319_v24 = vpop.xlane.xlu0 %318  ;;  %v405_v56 = vmul.f32 0.00390625, %v367_v42 }
 0x131   : > { %v389_v6 = vmul.f32 0.00390625, %v319_v24  ;;  %v607_v24 = vsel %vm517_vm10, %v606_v44, %v602_v23  ;;  %v856_v44 = vsub.s32 1, %v1912_v31  ;;  %v2346_v23 = vld [vmem:[#allocation24_spill] sm:$0xff] }
 0x132   : > { %v616_v42 = vrot.slane %v405_v56, %v1957_v12  ;;  %v612_v49 = vsel %vm524_vm11, %v611_v60, %v607_v24  ;;  %v2349_v24 = vld [vmem:[#allocation35_spill] sm:$0xff] }
 0x133   : > { %v370_v37 = vpop.xlane.xlu1 %369  ;;  %v530_v33 = vrot.slane %v389_v6, %v1957_v12  ;;  %v525_v12 = vsel %vm524_vm11, %v523_v50, %v518_v30  ;;  %v2351_v30 = vld [vmem:[#allocation31_spill] sm:$0xff] }
 0x134   : > { %v322_v34 = vpop.xlane.xlu0 %321  ;;  %v406_v29 = vmul.f32 0.00390625, %v370_v37  ;;  %v617_v46 = vsel %vm531_vm12, %v616_v42, %v612_v49 }
 0x135   : > { %v390_v40 = vmul.f32 0.00390625, %v322_v34  ;;  %v532_v53 = vsel %vm531_vm12, %v530_v33, %v525_v12  ;;  %v410_v34 = vld [vmem:[#allocation7] sm:$0xff] }
 0x136   : > { %v621_v7 = vrot.slane %v406_v29, %v1960_v55  ;;  %1192 = vmatpush3.msra.mxu1 %v410_v34  ;;  %v789_v29 = vsub.s32 0, %v1912_v31  ;;  %v2358_v34 = vld [vmem:[#allocation46_spill] sm:$0xff] }
 0x137   : > { %v373_v62 = vpop.xlane.xlu1 %372  ;;  %v537_v32 = vrot.slane %v390_v40, %v1960_v55 }
 0x138   : > { %v407_v13 = vmul.f32 0.00390625, %v373_v62  ;;  %v325_v19 = vpop.xlane.xlu0 %324  ;;  %v622_v55 = vsel %vm538_vm13, %v621_v7, %v617_v46  ;;  %v2347_v7 = vld [vmem:[#allocation25_spill] sm:$0xff] }
 0x139   : > { %v391_v52 = vmul.f32 0.00390625, %v325_v19  ;;  %v539_v47 = vsel %vm538_vm13, %v537_v32, %v532_v53  ;;  %v2354_v53 = vld [vmem:[#allocation38_spill] sm:$0xff] }
 0x13a   : > { %v626_v5 = vrot.slane %v407_v13, %v1965_v17 }
 0x13b   : > { %v376_v63 = vpop.xlane.xlu1 %375  ;;  %v544_v11 = vrot.slane %v391_v52, %v1965_v17 }
 0x13c   : > { %v408_v10 = vmul.f32 0.00390625, %v376_v63  ;;  %v328_v54 = vpop.xlane.xlu0 %327  ;;  %v627_v17 = vsel %vm545_vm14, %v626_v5, %v622_v55  ;;  %v2350_v5 = vld [vmem:[#allocation30_spill] sm:$0xff] }
 0x13d   : > { %v392_v59 = vmul.f32 0.00390625, %v328_v54  ;;  %v546_v36 = vsel %vm545_vm14, %v544_v11, %v539_v47  ;;  %v2352_v11 = vld [vmem:[#allocation42_spill] sm:$0xff]  ;;  %v2353_v54 = vld [vmem:[#allocation43_spill] sm:$0xff] }
 0x13e   : > { %v631_v3 = vrot.slane %v408_v10, %v1979_v45 }
 0x13f   : > { %v551_v37 = vrot.slane %v392_v59, %v1979_v45 }
 0x140   : > { %v632_v28 = vsel %vm552_vm15, %v631_v3, %v627_v17  ;;  %v2355_v3 = vld [vmem:[#allocation39_spill] sm:$0xff] }
 0x141   : > { %v553_v61 = vsel %vm552_vm15, %v551_v37, %v546_v36  ;;  %v2356_v37 = vld [vmem:[#allocation50_spill] sm:$0xff]  ;;  %v2357_v36 = vld [vmem:[#allocation51_spill] sm:$0xff] }
 0x142   : > { %v634_v35 = vsel %vm633_vm0, %v632_v28, %v553_v61 }
 0x143   : > { %1189 = vmatmul.mubr.f32.vlgmr.msra.gmra.mrb[0].mxu0 %v634_v35 }
 0x216   : > { %v702_v0 = vpop.f32.mrb[0].mxu0 }
 0x217   : > { %v706_v25 = vmax.f32 %v702_v0, 0.0  ;;  %v1190_v48 = vpop.f32.mrb[1].mxu0 }
 0x219   : > { %1194 = vmatmul.mubr.msk.f32.vlgmr.msra.gmra.mrb[0].mxu1 %vm707_vm1, %v706_v25  ;;  %v2359_v25 = vld [vmem:[#allocation47_spill] sm:$0xff] }
 0x2ec   : > { %v777_v56 = vpop.f32.mrb[0].mxu1 }
 0x2ed   : > { %v1171_v41 = vmul.f32 -1.442695, %v777_v56  ;;  %v1195_v22 = vpop.f32.mrb[1].mxu1  ;;  %v2360_v56 = vld [vmem:[#allocation58_spill] sm:$0xff] }
 0x2ee   : > { %v2361_v22 = vld [vmem:[#allocation59_spill] sm:$0xff] }
 0x2ef   : > { %1269 = vpow2.f32 %v1171_v41 }
 0x2f9   : > { %v1270_v45 = vpop.eup %1269 }
 0x2fa   : > { %v784_v6 = vadd.f32 1.0, %v1270_v45 }
 0x2fc   : > { %1271 = vrcp.f32 %v784_v6 }
 0x306   : > { %v1272_v58 = vpop.eup %1271 }
 0x307   : > { %v790_v16 = vrot.slane %v1272_v58, %v789_v29  ;;  %v857_v40 = vrot.slane %v1272_v58, %v856_v44  ;;  %v2362_v58 = vld [vmem:[#allocation54_spill] sm:$0xff]  ;;  %v2363_v44 = vld [vmem:[#allocation55_spill] sm:$0xff] }
 0x309   : > { %796 = vbcast.lane.b32.xlu1 %v790_v16, 264  ;;  %792 = vbcast.lane.b32.xlu0 %v790_v16, 256 }
 0x30d   : > { %800 = vbcast.lane.b32.xlu1 %v790_v16, 272  ;;  %808 = vbcast.lane.b32.xlu0 %v790_v16, 288 }
 0x311   : > { %804 = vbcast.lane.b32.xlu1 %v790_v16, 280  ;;  %816 = vbcast.lane.b32.xlu0 %v790_v16, 304 }
 0x315   : > { %812 = vbcast.lane.b32.xlu1 %v790_v16, 296  ;;  %824 = vbcast.lane.b32.xlu0 %v790_v16, 320 }
 0x319   : > { %820 = vbcast.lane.b32.xlu1 %v790_v16, 312  ;;  %832 = vbcast.lane.b32.xlu0 %v790_v16, 336 }
 0x31d   : > { %828 = vbcast.lane.b32.xlu1 %v790_v16, 328  ;;  %840 = vbcast.lane.b32.xlu0 %v790_v16, 352 }
 0x321   : > { %836 = vbcast.lane.b32.xlu1 %v790_v16, 344  ;;  %848 = vbcast.lane.b32.xlu0 %v790_v16, 368 }
 0x325   : > { %844 = vbcast.lane.b32.xlu1 %v790_v16, 360  ;;  %859 = vbcast.lane.b32.xlu0 %v857_v40, 256 }
 0x329   : > { %852 = vbcast.lane.b32.xlu1 %v790_v16, 376  ;;  %867 = vbcast.lane.b32.xlu0 %v857_v40, 272 }
 0x32d   : > { %863 = vbcast.lane.b32.xlu1 %v857_v40, 264  ;;  %875 = vbcast.lane.b32.xlu0 %v857_v40, 288 }
 0x331   : > { %871 = vbcast.lane.b32.xlu1 %v857_v40, 280  ;;  %883 = vbcast.lane.b32.xlu0 %v857_v40, 304 }
 0x335   : > { %879 = vbcast.lane.b32.xlu1 %v857_v40, 296  ;;  %891 = vbcast.lane.b32.xlu0 %v857_v40, 320 }
 0x339   : > { %887 = vbcast.lane.b32.xlu1 %v857_v40, 312  ;;  %899 = vbcast.lane.b32.xlu0 %v857_v40, 336 }
 0x33d   : > { %895 = vbcast.lane.b32.xlu1 %v857_v40, 328  ;;  %907 = vbcast.lane.b32.xlu0 %v857_v40, 352 }
 0x341   : > { %903 = vbcast.lane.b32.xlu1 %v857_v40, 344  ;;  %915 = vbcast.lane.b32.xlu0 %v857_v40, 368 }
 0x345   : > { %911 = vbcast.lane.b32.xlu1 %v857_v40, 360 }
 0x349   : > { %919 = vbcast.lane.b32.xlu1 %v857_v40, 376 }
 0x37b   : > { %v797_v31 = vpop.permute.xlu1 %796  ;;  %v793_v62 = vpop.permute.xlu0 %792 }
 0x37c   : > { %v923_v1 = vmul.f32 %v797_v31, %v1669_v8  ;;  %v924_v43 = vmul.f32 %v797_v31, %v1672_v9  ;;  %v921_v60 = vmul.f32 %v793_v62, %v1653_v2  ;;  %v922_v13 = vmul.f32 %v793_v62, %v1658_v4  ;;  %v2364_v31 = vld [vmem:[#allocation12_spill] sm:$0xff] }
 0x37e   : > { %987 = vst [vmem:[%s2043_s23 + $0x10] sm:$0xff] %v923_v1  ;;  %988 = vst [vmem:[%s2043_s23 + $0x18] sm:$0xff] %v924_v43  ;;  %v2365_v1 = vld [vmem:[#allocation13_spill] sm:$0xff] }
 0x37f   : > { %985 = vst [vmem:[%s2043_s23] sm:$0xff] %v921_v60  ;;  %986 = vst [vmem:[%s2043_s23 + $0x8] sm:$0xff] %v922_v13  ;;  %v801_v8 = vpop.permute.xlu1 %800  ;;  %v809_v2 = vpop.permute.xlu0 %808 }
 0x380   : > { %v925_v4 = vmul.f32 %v801_v8, %v1685_v14  ;;  %v926_v9 = vmul.f32 %v801_v8, %v1688_v15  ;;  %v929_v19 = vmul.f32 %v809_v2, %v1717_v26  ;;  %v930_v51 = vmul.f32 %v809_v2, %v1720_v27  ;;  %v2366_v8 = vld [vmem:[#allocation62_spill] sm:$0xff] }
 0x382   : > { %989 = vst [vmem:[%s2043_s23 + $0x20] sm:$0xff] %v925_v4  ;;  %990 = vst [vmem:[%s2043_s23 + $0x28] sm:$0xff] %v926_v9  ;;  %v2367_v4 = vld [vmem:[#allocation63_spill] sm:$0xff] }
 0x383   : > { %993 = vst [vmem:[%s2043_s23 + $0x40] sm:$0xff] %v929_v19  ;;  %994 = vst [vmem:[%s2043_s23 + $0x48] sm:$0xff] %v930_v51  ;;  %v805_v50 = vpop.permute.xlu1 %804  ;;  %v817_v42 = vpop.permute.xlu0 %816  ;;  %v2368_v19 = vld [vmem:[#allocation16_spill] sm:$0xff] }
 0x384   : > { %v927_v52 = vmul.f32 %v805_v50, %v1701_v20  ;;  %v928_v14 = vmul.f32 %v805_v50, %v1704_v21  ;;  %v933_v15 = vmul.f32 %v817_v42, %v1749_v38  ;;  %v934_v26 = vmul.f32 %v817_v42, %v1752_v39  ;;  %v2369_v50 = vld [vmem:[#allocation17_spill] sm:$0xff] }
 0x386   : > { %991 = vst [vmem:[%s2043_s23 + $0x30] sm:$0xff] %v927_v52  ;;  %992 = vst [vmem:[%s2043_s23 + $0x38] sm:$0xff] %v928_v14 }
 0x387   : > { %997 = vst [vmem:[%s2043_s23 + $0x60] sm:$0xff] %v933_v15  ;;  %998 = vst [vmem:[%s2043_s23 + $0x68] sm:$0xff] %v934_v26  ;;  %v813_v27 = vpop.permute.xlu1 %812  ;;  %v825_v18 = vpop.permute.xlu0 %824  ;;  %v2370_v15 = vld [vmem:[#allocation14_spill] sm:$0xff] }
 0x388   : > { %v931_v33 = vmul.f32 %v813_v27, %v2346_v23  ;;  %v932_v20 = vmul.f32 %v813_v27, %v2347_v7  ;;  %v937_v21 = vmul.f32 %v825_v18, %v2348_v57  ;;  %v938_v38 = vmul.f32 %v825_v18, %v2349_v24  ;;  %v2371_v27 = vld [vmem:[#allocation15_spill] sm:$0xff]  ;;  %v2372_v23 = vld [vmem:[#allocation20_spill] sm:$0xff]  ;;  %v2373_v7 = vld [vmem:[#allocation21_spill] sm:$0xff] }
 0x389   : > { %v2374_v24 = vld [vmem:[#allocation18_spill] sm:$0xff] }
 0x38a   : > { %995 = vst [vmem:[%s2043_s23 + $0x50] sm:$0xff] %v931_v33  ;;  %996 = vst [vmem:[%s2043_s23 + $0x58] sm:$0xff] %v932_v20 }
 0x38b   : > { %1001 = vst [vmem:[%s2043_s23 + $0x80] sm:$0xff] %v937_v21  ;;  %1002 = vst [vmem:[%s2043_s23 + $0x88] sm:$0xff] %v938_v38  ;;  %v821_v39 = vpop.permute.xlu1 %820  ;;  %v833_v32 = vpop.permute.xlu0 %832 }
 0x38c   : > { %v935_v63 = vmul.f32 %v821_v39, %v2350_v5  ;;  %v936_v49 = vmul.f32 %v821_v39, %v2351_v30  ;;  %v941_v10 = vmul.f32 %v833_v32, %v2352_v11  ;;  %v942_v12 = vmul.f32 %v833_v32, %v2353_v54  ;;  %v2375_v39 = vld [vmem:[#allocation19_spill] sm:$0xff]  ;;  %v2376_v5 = vld [vmem:[#allocation26_spill] sm:$0xff] }
 0x38d   : > { %v2377_v30 = vld [vmem:[#allocation27_spill] sm:$0xff]  ;;  %v2378_v54 = vld [vmem:[#allocation22_spill] sm:$0xff] }
 0x38e   : > { %999 = vst [vmem:[%s2043_s23 + $0x70] sm:$0xff] %v935_v63  ;;  %1000 = vst [vmem:[%s2043_s23 + $0x78] sm:$0xff] %v936_v49 }
 0x38f   : > { %1005 = vst [vmem:[%s2043_s23 + $0xa0] sm:$0xff] %v941_v10  ;;  %1006 = vst [vmem:[%s2043_s23 + $0xa8] sm:$0xff] %v942_v12  ;;  %v829_v46 = vpop.permute.xlu1 %828  ;;  %v841_v59 = vpop.permute.xlu0 %840 }
 0x390   : > { %v939_v55 = vmul.f32 %v829_v46, %v2354_v53  ;;  %v940_v47 = vmul.f32 %v829_v46, %v2355_v3  ;;  %v945_v17 = vmul.f32 %v841_v59, %v2356_v37  ;;  %v946_v28 = vmul.f32 %v841_v59, %v2357_v36  ;;  %v2379_v46 = vld [vmem:[#allocation23_spill] sm:$0xff]  ;;  %v2380_v53 = vld [vmem:[#allocation32_spill] sm:$0xff]  ;;  %v2381_v3 = vld [vmem:[#allocation33_spill] sm:$0xff] }
 0x391   : > { %v2382_v36 = vld [vmem:[#allocation28_spill] sm:$0xff] }
 0x392   : > { %1003 = vst [vmem:[%s2043_s23 + $0x90] sm:$0xff] %v939_v55  ;;  %1004 = vst [vmem:[%s2043_s23 + $0x98] sm:$0xff] %v940_v47 }
 0x393   : > { %1009 = vst [vmem:[%s2043_s23 + $0xc0] sm:$0xff] %v945_v17  ;;  %1010 = vst [vmem:[%s2043_s23 + $0xc8] sm:$0xff] %v946_v28  ;;  %v837_v61 = vpop.permute.xlu1 %836  ;;  %v849_v35 = vpop.permute.xlu0 %848 }
 0x394   : > { %v943_v0 = vmul.f32 %v837_v61, %v2358_v34  ;;  %v944_v48 = vmul.f32 %v837_v61, %v2359_v25  ;;  %v949_v41 = vmul.f32 %v849_v35, %v2360_v56  ;;  %v950_v45 = vmul.f32 %v849_v35, %v2361_v22  ;;  %v2383_v61 = vld [vmem:[#allocation29_spill] sm:$0xff]  ;;  %v2384_v34 = vld [vmem:[#allocation40_spill] sm:$0xff] }
 0x395   : > { %v2385_v25 = vld [vmem:[#allocation41_spill] sm:$0xff]  ;;  %v2386_v22 = vld [vmem:[#allocation36_spill] sm:$0xff] }
 0x396   : > { %1007 = vst [vmem:[%s2043_s23 + $0xb0] sm:$0xff] %v943_v0  ;;  %1008 = vst [vmem:[%s2043_s23 + $0xb8] sm:$0xff] %v944_v48 }
 0x397   : > { %1013 = vst [vmem:[%s2043_s23 + $0xe0] sm:$0xff] %v949_v41  ;;  %1014 = vst [vmem:[%s2043_s23 + $0xe8] sm:$0xff] %v950_v45  ;;  %v845_v6 = vpop.permute.xlu1 %844  ;;  %v860_v29 = vpop.permute.xlu0 %859 }
 0x398   : > { %v947_v16 = vmul.f32 %v845_v6, %v2362_v58  ;;  %v948_v40 = vmul.f32 %v845_v6, %v2363_v44  ;;  %v953_v62 = vmul.f32 %v860_v29, %v2364_v31  ;;  %v954_v43 = vmul.f32 %v860_v29, %v2365_v1  ;;  %v2387_v6 = vld [vmem:[#allocation37_spill] sm:$0xff]  ;;  %v2388_v58 = vld [vmem:[#allocation48_spill] sm:$0xff] }
 0x399   : > { %v2389_v44 = vld [vmem:[#allocation49_spill] sm:$0xff]  ;;  %v2390_v1 = vld [vmem:[#allocation44_spill] sm:$0xff] }
 0x39a   : > { %1011 = vst [vmem:[%s2043_s23 + $0xd0] sm:$0xff] %v947_v16  ;;  %1012 = vst [vmem:[%s2043_s23 + $0xd8] sm:$0xff] %v948_v40 }
 0x39b   : > { %1017 = vst [vmem:[%s2043_s23 + $0x100] sm:$0xff] %v953_v62  ;;  %1018 = vst [vmem:[%s2043_s23 + $0x108] sm:$0xff] %v954_v43  ;;  %v853_v60 = vpop.permute.xlu1 %852  ;;  %v868_v13 = vpop.permute.xlu0 %867 }
 0x39c   : > { %v951_v2 = vmul.f32 %v853_v60, %v2366_v8  ;;  %v952_v9 = vmul.f32 %v853_v60, %v2367_v4  ;;  %v957_v51 = vmul.f32 %v868_v13, %v2368_v19  ;;  %v958_v42 = vmul.f32 %v868_v13, %v2369_v50  ;;  %v2391_v60 = vld [vmem:[#allocation45_spill] sm:$0xff]  ;;  %v2392_v8 = vld [vmem:[#allocation56_spill] sm:$0xff] }
 0x39d   : > { %v2393_v4 = vld [vmem:[#allocation57_spill] sm:$0xff] }
 0x39e   : > { %1015 = vst [vmem:[%s2043_s23 + $0xf0] sm:$0xff] %v951_v2  ;;  %1016 = vst [vmem:[%s2043_s23 + $0xf8] sm:$0xff] %v952_v9 }
 0x39f   : > { %1021 = vst [vmem:[%s2043_s23 + $0x120] sm:$0xff] %v957_v51  ;;  %1022 = vst [vmem:[%s2043_s23 + $0x128] sm:$0xff] %v958_v42  ;;  %v864_v52 = vpop.permute.xlu1 %863  ;;  %v876_v14 = vpop.permute.xlu0 %875  ;;  %v2394_v51 = vld [vmem:[#allocation52_spill] sm:$0xff]  ;;  %v2395_v42 = vld [vmem:[#allocation53_spill] sm:$0xff] }
 0x3a0   : > { %v955_v26 = vmul.f32 %v864_v52, %v2370_v15  ;;  %v956_v18 = vmul.f32 %v864_v52, %v2371_v27  ;;  %v961_v33 = vmul.f32 %v876_v14, %v2372_v23  ;;  %v962_v20 = vmul.f32 %v876_v14, %v2373_v7  ;;  %v2396_v15 = vld [vmem:[#allocation60_spill] sm:$0xff]  ;;  %v2397_v27 = vld [vmem:[#allocation61_spill] sm:$0xff] }
 0x3a2   : > { %1019 = vst [vmem:[%s2043_s23 + $0x110] sm:$0xff] %v955_v26  ;;  %1020 = vst [vmem:[%s2043_s23 + $0x118] sm:$0xff] %v956_v18 }
 0x3a3   : > { %1025 = vst [vmem:[%s2043_s23 + $0x140] sm:$0xff] %v961_v33  ;;  %1026 = vst [vmem:[%s2043_s23 + $0x148] sm:$0xff] %v962_v20  ;;  %v872_v57 = vpop.permute.xlu1 %871  ;;  %v884_v21 = vpop.permute.xlu0 %883 }
 0x3a4   : > { %v959_v38 = vmul.f32 %v872_v57, %v2374_v24  ;;  %v960_v32 = vmul.f32 %v872_v57, %v2375_v39  ;;  %v965_v63 = vmul.f32 %v884_v21, %v2376_v5  ;;  %v966_v49 = vmul.f32 %v884_v21, %v2377_v30 }
 0x3a6   : > { %1023 = vst [vmem:[%s2043_s23 + $0x130] sm:$0xff] %v959_v38  ;;  %1024 = vst [vmem:[%s2043_s23 + $0x138] sm:$0xff] %v960_v32 }
 0x3a7   : > { %1029 = vst [vmem:[%s2043_s23 + $0x160] sm:$0xff] %v965_v63  ;;  %1030 = vst [vmem:[%s2043_s23 + $0x168] sm:$0xff] %v966_v49  ;;  %v880_v11 = vpop.permute.xlu1 %879  ;;  %v892_v10 = vpop.permute.xlu0 %891 }
 0x3a8   : > { %v963_v12 = vmul.f32 %v880_v11, %v2378_v54  ;;  %v964_v59 = vmul.f32 %v880_v11, %v2379_v46  ;;  %v969_v55 = vmul.f32 %v892_v10, %v2380_v53  ;;  %v970_v47 = vmul.f32 %v892_v10, %v2381_v3 }
 0x3aa   : > { %1027 = vst [vmem:[%s2043_s23 + $0x150] sm:$0xff] %v963_v12  ;;  %1028 = vst [vmem:[%s2043_s23 + $0x158] sm:$0xff] %v964_v59 }
 0x3ab   : > { %1033 = vst [vmem:[%s2043_s23 + $0x180] sm:$0xff] %v969_v55  ;;  %1034 = vst [vmem:[%s2043_s23 + $0x188] sm:$0xff] %v970_v47  ;;  %v888_v37 = vpop.permute.xlu1 %887  ;;  %v900_v17 = vpop.permute.xlu0 %899 }
 0x3ac   : > { %v967_v28 = vmul.f32 %v888_v37, %v2382_v36  ;;  %v968_v35 = vmul.f32 %v888_v37, %v2383_v61  ;;  %v973_v0 = vmul.f32 %v900_v17, %v2384_v34  ;;  %v974_v48 = vmul.f32 %v900_v17, %v2385_v25 }
 0x3ae   : > { %1031 = vst [vmem:[%s2043_s23 + $0x170] sm:$0xff] %v967_v28  ;;  %1032 = vst [vmem:[%s2043_s23 + $0x178] sm:$0xff] %v968_v35 }
 0x3af   : > { %1037 = vst [vmem:[%s2043_s23 + $0x1a0] sm:$0xff] %v973_v0  ;;  %1038 = vst [vmem:[%s2043_s23 + $0x1a8] sm:$0xff] %v974_v48  ;;  %v896_v56 = vpop.permute.xlu1 %895  ;;  %v908_v41 = vpop.permute.xlu0 %907 }
 0x3b0   : > { %v971_v45 = vmul.f32 %v896_v56, %v2386_v22  ;;  %v972_v29 = vmul.f32 %v896_v56, %v2387_v6  ;;  %v977_v16 = vmul.f32 %v908_v41, %v2388_v58  ;;  %v978_v40 = vmul.f32 %v908_v41, %v2389_v44 }
 0x3b2   : > { %1035 = vst [vmem:[%s2043_s23 + $0x190] sm:$0xff] %v971_v45  ;;  %1036 = vst [vmem:[%s2043_s23 + $0x198] sm:$0xff] %v972_v29 }
 0x3b3   : > { %1041 = vst [vmem:[%s2043_s23 + $0x1c0] sm:$0xff] %v977_v16  ;;  %1042 = vst [vmem:[%s2043_s23 + $0x1c8] sm:$0xff] %v978_v40  ;;  %v904_v31 = vpop.permute.xlu1 %903  ;;  %v916_v62 = vpop.permute.xlu0 %915 }
 0x3b4   : > { %v975_v43 = vmul.f32 %v904_v31, %v2390_v1  ;;  %v976_v13 = vmul.f32 %v904_v31, %v2391_v60  ;;  %v981_v2 = vmul.f32 %v916_v62, %v2392_v8  ;;  %v982_v9 = vmul.f32 %v916_v62, %v2393_v4 }
 0x3b6   : > { %1039 = vst [vmem:[%s2043_s23 + $0x1b0] sm:$0xff] %v975_v43  ;;  %1040 = vst [vmem:[%s2043_s23 + $0x1b8] sm:$0xff] %v976_v13 }
 0x3b7   : > { %1045 = vst [vmem:[%s2043_s23 + $0x1e0] sm:$0xff] %v981_v2  ;;  %1046 = vst [vmem:[%s2043_s23 + $0x1e8] sm:$0xff] %v982_v9  ;;  %v912_v19 = vpop.permute.xlu1 %911 }
 0x3b8   : > { %v979_v50 = vmul.f32 %v912_v19, %v2394_v51  ;;  %v980_v52 = vmul.f32 %v912_v19, %v2395_v42 }
 0x3ba   : > { %1043 = vst [vmem:[%s2043_s23 + $0x1d0] sm:$0xff] %v979_v50  ;;  %1044 = vst [vmem:[%s2043_s23 + $0x1d8] sm:$0xff] %v980_v52 }
 0x3bb   : > { %v920_v14 = vpop.permute.xlu1 %919 }
 0x3bc   : > { %v983_v26 = vmul.f32 %v920_v14, %v2396_v15  ;;  %v984_v18 = vmul.f32 %v920_v14, %v2397_v27 }
 0x3be   : > { %1047 = vst [vmem:[%s2043_s23 + $0x1f0] sm:$0xff] %v983_v26  ;;  %1048 = vst [vmem:[%s2043_s23 + $0x1f8] sm:$0xff] %v984_v18 }
 0x3bf   : > { %1372 = shalt.err (!%p1369_p6)
}
 0x3c0   : > { %s1373_s22 = scalar_lea.hbm %s2170_s9, 8192  ;;  %s1377_s29 = scalar_lea.hbm %s2223_s3, 16384 }
 0x3c1   : > { %p1374_p12 = scmp.ne.s32.totalorder %s2170_s9, %s1373_s22  ;;  %p1378_p11 = scmp.lt.u32.totalorder %s2170_s9, %s2223_s3 }
 0x3c2   : > { %p1379_p7 = scmp.lt.u32.totalorder %s1377_s29, %s1373_s22  ;;  %p1381_p8 = scmp.lt.u32.totalorder %s1373_s22, %s2170_s9 }
 0x3c3   : > { %p1375_p13 = pnand %p1374_p12, %p2398_p4 }
 0x3c4   : > { %p1380_p3 = por %p1379_p7, %p1378_p11 }
 0x3c5   : > { %p1376_p1 = pneg %p1375_p13 }
 0x3c6   : > { %p1382_p5 = por %p1381_p8, %p1380_p3 }
 0x3c8   : > { %p1383_p10 = pnand %p1382_p5, %p1376_p1 }
 0x3ca   : > { %1386 = shalt.err (!%p1383_p10)
}
 0x3cb   : > { %s1439_s28 = smov 256   ;;  %s1440_s23 = smov 16  }
 0x3cc   : > { %1206 = dma.vmem_to_hbm [thread:$0]  (%p2398_p4), %s2172_s30, 8192, %s2170_s9, %s1050_s16, %s1439_s28, %s1439_s28, %s1440_s23  }
 0x3cd PF: > { %s1079_s26 = sand.u32 1, %s1417_s12   ;;  %p2399_p2 = scmp.ne.s32.totalorder %s2284_s25, 0 }
 0x3ce   : > { %p2400_p0 = scmp.ge.s32.totalorder %s1429_s15, 2  ;;  %s1080_s7 = scalar_lea.sflag [#allocation4], %s1079_s26 }
 0x3d0   : > { %p1220_p9 = pnand %p2400_p0, %p2399_p2 }
 0x3d2   : > { %1412 = dma.done.wait (!%p1220_p9), %s1080_s7, 8192  }
 0x3d3   : > { %1414 = vsyncadd (!%p1220_p9), %s1080_s7, 4294959104  ;;  %p17_p6 = scmp.ge.s32.totalorder %s1486_s18, 4   ;;  %s2401_s12 = smov %s1421_s13 }
 0x3d4   : > { %s2402_s13 = smov %s1425_s14  ;;  %s2403_s14 = smov %s1498_s21 }
 0x3d5   : > { %s2404_s15 = smov %s1486_s18  ;;  %19 = sbr.rel (!%p17_p6) target bundleno = 6 (0x6), region = 85 }
 0x3dc   :  { %1085 = vsyncpa [#allocation3], 1 }
 0x3dd   :  { %1087 = vsyncpa [#allocation3 + $0x1], 1 }
 0x3de   :  { %1088 = vsyncpa [#allocation6], 1 }
 0x3df   :  { %1089 = vsyncpa [#allocation4], 1 }
 0x3e0   :  { %1091 = vsyncpa [#allocation4 + $0x1], 1 }

</bundles_post_ra>
